<compile_context>
chip_gen: v6e
topology: v6e:2x2x1
jax: 0.10.0
libtpu: 0.0.40
codegen_flags: <defaults>
</compile_context>

<pallas_src>
import math
import numpy as np
import jax
import jax.numpy as jnp
from jax.experimental import pallas as pl
from jax.experimental.pallas import tpu as pltpu

# ----------------------- module configuration (small, but faithful) -----------------------
SAMPLE_RATE = 16000
WIN_LENGTH = 64                                   # n_window_size
HOP_LENGTH = 32                                   # n_window_stride
N_FFT = 2 ** math.ceil(math.log2(WIN_LENGTH))     # 64
N_FREQ = N_FFT // 2 + 1                           # 33 (onesided)
NFILT = 16
LOWFREQ = 0.0
HIGHFREQ = SAMPLE_RATE / 2.0
PREEMPH = 0.97
DITHER = 1e-5                                     # CONSTANT
PAD_TO = 16
PAD_VALUE = 0.0
MAG_POWER = 2.0
LOG_GUARD = 2.0 ** (-24)                          # log_zero_guard_value ('add')
NORM_CONST = 1e-5                                 # added to std in normalize_batch

LANE = 128                                        # TPU vreg lane width
HALF = LANE // 2                                  # 64 lanes for re, 64 for im (>= N_FREQ)

# TODO(synk): in-kernel framing assumes hop divides n_fft (true for this config);
#             the default 320/160/512 config would need per-row DMA instead.
assert N_FFT % HOP_LENGTH == 0
FRAME_CHUNKS = N_FFT // HOP_LENGTH                # hop-sized chunks per frame (=2 here)


# ----------------------- deterministic parameter construction (numpy) -----------------------
def _hz_to_mel(freqs):
    freqs = np.asarray(freqs, dtype=np.float64)
    f_sp = 200.0 / 3.0
    mels = freqs / f_sp
    min_log_hz = 1000.0
    min_log_mel = min_log_hz / f_sp
    logstep = np.log(6.4) / 27.0
    safe = np.maximum(freqs, 1e-10)
    return np.where(freqs >= min_log_hz,
                    min_log_mel + np.log(safe / min_log_hz) / logstep, mels)


def _mel_to_hz(mels):
    mels = np.asarray(mels, dtype=np.float64)
    f_sp = 200.0 / 3.0
    freqs = f_sp * mels
    min_log_hz = 1000.0
    min_log_mel = min_log_hz / f_sp
    logstep = np.log(6.4) / 27.0
    return np.where(mels >= min_log_mel,
                    min_log_hz * np.exp(logstep * (mels - min_log_mel)), freqs)


def mel_filterbank(sr, n_fft, n_mels, fmin, fmax):
    """librosa.filters.mel (slaney mel scale, slaney norm)."""
    n_freq = n_fft // 2 + 1
    fftfreqs = np.linspace(0.0, sr / 2.0, n_freq)
    mel_pts = np.linspace(_hz_to_mel(fmin), _hz_to_mel(fmax), n_mels + 2)
    mel_f = _mel_to_hz(mel_pts)
    fdiff = np.diff(mel_f)
    ramps = mel_f[:, None] - fftfreqs[None, :]
    lower = -ramps[:-2] / fdiff[:-1, None]
    upper = ramps[2:] / fdiff[1:, None]
    weights = np.maximum(0.0, np.minimum(lower, upper))
    enorm = 2.0 / (mel_f[2:n_mels + 2] - mel_f[:n_mels])
    weights = weights * enorm[:, None]
    return weights.astype(np.float32)                       # (n_mels, n_freq)


def _build_packed_basis():
    """Hann-windowed DFT basis packed lane-dense: (N_FFT, 128), cols [0,33) real, [64,97) imag."""
    n = np.arange(WIN_LENGTH, dtype=np.float64)
    win = 0.5 - 0.5 * np.cos(2.0 * np.pi * n / (WIN_LENGTH - 1))   # hann, periodic=False
    w = np.zeros(N_FFT, dtype=np.float64)
    left = (N_FFT - WIN_LENGTH) // 2                               # torch.stft centers the window
    w[left:left + WIN_LENGTH] = win
    k = np.arange(N_FFT, dtype=np.float64)[:, None]                # sample index
    f = np.arange(N_FREQ, dtype=np.float64)[None, :]               # freq bin
    ang = 2.0 * np.pi * k * f / N_FFT
    packed = np.zeros((N_FFT, 2 * HALF), dtype=np.float32)
    packed[:, :N_FREQ] = (w[:, None] * np.cos(ang)).astype(np.float32)
    packed[:, HALF:HALF + N_FREQ] = (-w[:, None] * np.sin(ang)).astype(np.float32)
    return packed


BASIS_PACKED_NP = _build_packed_basis()                                 # (64, 128)
FB_NP = mel_filterbank(SAMPLE_RATE, N_FFT, NFILT, LOWFREQ, HIGHFREQ)    # (16, 33)
FB_PAD_NP = np.zeros((NFILT, HALF), dtype=np.float32)
FB_PAD_NP[:, :N_FREQ] = FB_NP

BASIS_PACKED = jnp.asarray(BASIS_PACKED_NP)
FB_PAD = jnp.asarray(FB_PAD_NP)


# ----------------------- fused Pallas kernel -----------------------
def _fused_kernel(seq_ref, x_ref, basis_ref, fb_ref, out_ref):
    b = pl.program_id(0)
    n_valid = seq_ref[b]                                    # valid frame count (int32)
    t_tile = out_ref.shape[2]                               # static, multiple of 128

    # --- build frames implicitly and run the windowed DFT on the MXU ---
    # frame t = concat(rows[t], rows[t+1], ...) of the hop-strided waveform view;
    # equivalently: sum over hop-chunks of (chunk rows) @ (basis chunk).
    acc = None
    for c in range(FRAME_CHUNKS):
        seg = x_ref[0, c:c + t_tile, :]                     # (t_tile, HOP)
        bas = basis_ref[c * HOP_LENGTH:(c + 1) * HOP_LENGTH, :]   # (HOP, 128)
        term = jnp.dot(seg, bas, preferred_element_type=jnp.float32)
        acc = term if acc is None else acc + term
    re = acc[:, :HALF]                                      # (t_tile, 64), cols >= N_FREQ are 0
    im = acc[:, HALF:]

    sq = re * re + im * im                                  # power spectrum (no sqrt needed)
    if MAG_POWER == 2.0:
        spec = sq
    elif MAG_POWER == 1.0:
        spec = jnp.sqrt(sq)
    else:
        spec = jnp.power(sq, MAG_POWER / 2.0)

    # --- mel filterbank, keeping time on the lane axis: mel_t[m,t] = sum_f fb[m,f]*spec[t,f] ---
    mel_t = jax.lax.dot_general(fb_ref[...], spec,
                                dimension_numbers=(((1,), (1,)), ((), ())),
                                preferred_element_type=jnp.float32)     # (NFILT, t_tile)
    feat = jnp.log(mel_t + LOG_GUARD)                       # log_zero_guard_type='add'

    # --- 'per_feature' normalization over valid frames (one-pass mean/var) + mask fill ---
    t_idx = jax.lax.broadcasted_iota(jnp.int32, feat.shape, 1)
    valid = t_idx < n_valid
    nf = jnp.maximum(n_valid, 1).astype(jnp.float32)
    xm = jnp.where(valid, feat, 0.0)
    s = jnp.sum(xm, axis=1, keepdims=True)
    ss = jnp.sum(xm * xm, axis=1, keepdims=True)
    mean = s / nf
    var = jnp.maximum(ss - s * mean, 0.0) / jnp.maximum(nf - 1.0, 1.0)  # torch.std: ddof=1
    std = jnp.sqrt(var) + NORM_CONST
    y = (feat - mean) / std
    out_ref[0] = jnp.where(valid, y, PAD_VALUE)


# ----------------------- glue (dither, preemphasis, reflect pad, lane-dense crop) -----------------------
def _round_up(v, m):
    return (v + m - 1) // m * m


def _preprocess(x, dither_key):
    x = x.astype(jnp.float32)
    if DITHER > 0:
        # TODO(synk): torch.randn_like RNG stream cannot be reproduced; deterministic jax noise.
        x = x + DITHER * jax.random.normal(dither_key, x.shape, dtype=jnp.float32)
    if PREEMPH is not None:
        x = jnp.concatenate([x[:, :1], x[:, 1:] - PREEMPH * x[:, :-1]], axis=1)
    pad = N_FFT // 2
    return jnp.pad(x, ((0, 0), (pad, pad)), mode="reflect")   # torch.stft(center=True)


def filterbank_features(x, seq_len, *, dither_key):
    """Pallas implementation of FilterbankFeatures.forward. Returns (features, seq_len_frames)."""
    B, _ = x.shape
    seq_len_frames = jnp.ceil(seq_len.astype(jnp.float32) / HOP_LENGTH).astype(jnp.int32)

    xp = _preprocess(x, dither_key)                           # (B, L + n_fft)
    l_pad = xp.shape[1]
    n_frames = 1 + (l_pad - N_FFT) // HOP_LENGTH
    t_tile = _round_up(max(n_frames, 1), LANE)                # lane-dense time axis (>=128)
    n_rows = t_tile + FRAME_CHUNKS - 1
    total = n_rows * HOP_LENGTH
    if total >= l_pad:
        xp = jnp.pad(xp, ((0, 0), (0, total - l_pad)))
    else:
        xp = xp[:, :total]
    x_rows = xp.reshape(B, n_rows, HOP_LENGTH)                # hop-strided waveform view (no gather)

    out_wide = pl.pallas_call(
        _fused_kernel,
        out_shape=jax.ShapeDtypeStruct((B, NFILT, t_tile), jnp.float32),
        grid_spec=pltpu.PrefetchScalarGridSpec(
            num_scalar_prefetch=1,                            # seq_len_frames -> SMEM
            grid=(B,),
            in_specs=[
                pl.BlockSpec((1, n_rows, HOP_LENGTH), lambda b, sl: (b, 0, 0)),
                pl.BlockSpec((N_FFT, 2 * HALF), lambda b, sl: (0, 0)),
                pl.BlockSpec((NFILT, HALF), lambda b, sl: (0, 0)),
            ],
            out_specs=pl.BlockSpec((1, NFILT, t_tile), lambda b, sl: (b, 0, 0)),
        ),
        compiler_params=pltpu.CompilerParams(dimension_semantics=("parallel",)),
    )(seq_len_frames, x_rows, BASIS_PACKED, FB_PAD)

    # PyTorch pads time to a multiple of pad_to; the wide kernel output already holds
    # pad_value beyond the valid frames, so just crop the 128-lane padding back down.
    if PAD_TO > 0:
        t_out = n_frames + (PAD_TO - n_frames % PAD_TO) % PAD_TO
    else:
        t_out = n_frames
    return out_wide[:, :, :t_out], seq_len_frames


# ----------------------- pure-JAX reference (same math, XLA ops) -----------------------
def reference_forward(x, seq_len, dither_key):
    seq_len_frames = jnp.ceil(seq_len.astype(jnp.float32) / HOP_LENGTH).astype(jnp.int32)
    xp = _preprocess(x, dither_key)
    l_pad = xp.shape[1]
    n_frames = 1 + (l_pad - N_FFT) // HOP_LENGTH
    idx = np.arange(n_frames)[:, None] * HOP_LENGTH + np.arange(N_FFT)[None, :]
    frames = xp[:, idx]                                       # (B, T, N_FFT)
    basis_re = BASIS_PACKED[:, :N_FREQ]
    basis_im = BASIS_PACKED[:, HALF:HALF + N_FREQ]
    re = jnp.einsum("btk,kf->btf", frames, basis_re)
    im = jnp.einsum("btk,kf->btf", frames, basis_im)
    spec = re * re + im * im                                  # mag_power == 2
    mel = jnp.einsum("btf,mf->btm", spec, jnp.asarray(FB_NP))
    feat = jnp.transpose(jnp.log(mel + LOG_GUARD), (0, 2, 1)) # (B, NFILT, T)
    if PAD_TO > 0:
        pad_amt = feat.shape[-1] % PAD_TO
        if pad_amt != 0:
            feat = jnp.pad(feat, ((0, 0), (0, 0), (0, PAD_TO - pad_amt)),
                           constant_values=PAD_VALUE)
    tp = feat.shape[-1]
    t = jnp.arange(tp)
    valid = t[None, :] < seq_len_frames[:, None]              # (B, Tp)
    nf = seq_len_frames.astype(jnp.float32)
    xm = jnp.where(valid[:, None, :], feat, 0.0)
    mean = xm.sum(-1) / nf[:, None]
    d = jnp.where(valid[:, None, :], feat - mean[:, :, None], 0.0)
    var = (d * d).sum(-1) / (nf[:, None] - 1.0)
    std = jnp.sqrt(var) + NORM_CONST
    y = (feat - mean[:, :, None]) / std[:, :, None]
    out = jnp.where(valid[:, None, :], y, PAD_VALUE)
    return out, seq_len_frames


# ----------------------- main -----------------------
if __name__ == "__main__":
    key = jax.random.PRNGKey(0)
    k_sig, k_dither = jax.random.split(key)

    B, L = 2, 512
    x = jax.random.normal(k_sig, (B, L), dtype=jnp.float32)
    seq_len = jnp.array([L, L - 3 * HOP_LENGTH], dtype=jnp.int32)

    out, out_len = filterbank_features(x, seq_len, dither_key=k_dither)
    out = jax.block_until_ready(out)
    out_len = jax.block_until_ready(out_len)

    ref, ref_len = reference_forward(x, seq_len, k_dither)
    ref = jax.block_until_ready(ref)

    T_frames = 1 + L // HOP_LENGTH                                       # 17
    T_pad = T_frames + (PAD_TO - T_frames % PAD_TO) % PAD_TO             # 32
    assert out.shape == (B, NFILT, T_pad), out.shape
    assert np.array_equal(np.asarray(out_len), np.asarray(ref_len))
    np.testing.assert_allclose(np.asarray(out), np.asarray(ref), rtol=5e-2, atol=5e-2)

    print("KERNEL_OK")
</pallas_src>

<mosaic_0001>
module attributes {stable_mosaic.version = 11 : i64} {
  func.func @_fused_kernel(%arg0: i32, %arg1: memref<2xi32, #tpu.memory_space<smem>>, %arg2: memref<1x129x32xf32, #tpu.memory_space<vmem>>, %arg3: memref<64x128xf32, #tpu.memory_space<vmem>>, %arg4: memref<16x64xf32, #tpu.memory_space<vmem>>, %arg5: memref<1x16x128xf32, #tpu.memory_space<vmem>>) attributes {dimension_semantics = [#tpu.dimension_semantics<parallel>], iteration_bounds = array<i64: 2>, scalar_prefetch = 1 : i64, scratch_operands = 0 : i64, tpu.core_type = #tpu.core_type<tc>, window_params = [{transform_indices = @transform_0, window_bounds = array<i64: 1, 129, 32>}, {pipeline_mode = #tpu.pipeline_mode<synchronous>, transform_indices = @transform_1, window_bounds = array<i64: 64, 128>}, {pipeline_mode = #tpu.pipeline_mode<synchronous>, transform_indices = @transform_2, window_bounds = array<i64: 16, 64>}, {transform_indices = @transform_3, window_bounds = array<i64: 1, 16, 128>}]} {
    %0 = arith.index_cast %arg0 : i32 to index
    %1 = memref.load %arg1[%0] : memref<2xi32, #tpu.memory_space<smem>>
    %c0 = arith.constant 0 : index
    %c0_0 = arith.constant 0 : index
    %c0_1 = arith.constant 0 : index
    %2 = vector.load %arg2[%c0, %c0_0, %c0_1] : memref<1x129x32xf32, #tpu.memory_space<vmem>>, vector<1x128x32xf32>
    %3 = vector.shape_cast %2 : vector<1x128x32xf32> to vector<128x32xf32>
    %c0_2 = arith.constant 0 : index
    %c0_3 = arith.constant 0 : index
    %4 = vector.load %arg3[%c0_2, %c0_3] : memref<64x128xf32, #tpu.memory_space<vmem>>, vector<32x128xf32>
    %cst = arith.constant dense<0.000000e+00> : vector<128x128xf32>
    %5 = tpu.matmul %3, %4, %cst {dimension_numbers = #tpu.dot_dimension_numbers<[1], [0], [0], [1], [0, 0, 1, 1], [], []>} : vector<128x32xf32>, vector<32x128xf32>, vector<128x128xf32> -> vector<128x128xf32>
    %c0_4 = arith.constant 0 : index
    %c1 = arith.constant 1 : index
    %c0_5 = arith.constant 0 : index
    %6 = vector.load %arg2[%c0_4, %c1, %c0_5] : memref<1x129x32xf32, #tpu.memory_space<vmem>>, vector<1x128x32xf32>
    %7 = vector.shape_cast %6 : vector<1x128x32xf32> to vector<128x32xf32>
    %c32 = arith.constant 32 : index
    %c0_6 = arith.constant 0 : index
    %8 = vector.load %arg3[%c32, %c0_6] : memref<64x128xf32, #tpu.memory_space<vmem>>, vector<32x128xf32>
    %cst_7 = arith.constant dense<0.000000e+00> : vector<128x128xf32>
    %9 = tpu.matmul %7, %8, %cst_7 {dimension_numbers = #tpu.dot_dimension_numbers<[1], [0], [0], [1], [0, 0, 1, 1], [], []>} : vector<128x32xf32>, vector<32x128xf32>, vector<128x128xf32> -> vector<128x128xf32>
    %10 = arith.addf %5, %9 : vector<128x128xf32>
    %11 = vector.extract_strided_slice %10 {offsets = [0, 0], sizes = [128, 64], strides = [1, 1]} : vector<128x128xf32> to vector<128x64xf32>
    %12 = vector.extract_strided_slice %10 {offsets = [0, 64], sizes = [128, 64], strides = [1, 1]} : vector<128x128xf32> to vector<128x64xf32>
    %13 = arith.mulf %11, %11 : vector<128x64xf32>
    %14 = arith.mulf %12, %12 : vector<128x64xf32>
    %15 = arith.addf %13, %14 : vector<128x64xf32>
    %c0_8 = arith.constant 0 : index
    %c0_9 = arith.constant 0 : index
    %16 = vector.load %arg4[%c0_8, %c0_9] : memref<16x64xf32, #tpu.memory_space<vmem>>, vector<16x64xf32>
    %cst_10 = arith.constant dense<0.000000e+00> : vector<16x128xf32>
    %17 = tpu.matmul %16, %15, %cst_10 {dimension_numbers = #tpu.dot_dimension_numbers<[1], [1], [0], [0], [0, 0, 1, 0], [], []>} : vector<16x64xf32>, vector<128x64xf32>, vector<16x128xf32> -> vector<16x128xf32>
    %cst_11 = arith.constant 5.96046448E-8 : f32
    %18 = vector.broadcast %cst_11 : f32 to vector<16x128xf32>
    %19 = arith.addf %17, %18 : vector<16x128xf32>
    %20 = math.log %19 : vector<16x128xf32>
    %21 = tpu.iota {dimensions = array<i32: 1>} : vector<16x128xi32>
    %22 = vector.broadcast %1 : i32 to vector<16x128xi32>
    %23 = arith.cmpi slt, %21, %22 : vector<16x128xi32>
    %c1_i32 = arith.constant 1 : i32
    %24 = arith.maxsi %1, %c1_i32 : i32
    %25 = arith.sitofp %24 : i32 to f32
    %cst_12 = arith.constant 0.000000e+00 : f32
    %26 = vector.broadcast %cst_12 : f32 to vector<16x128xf32>
    %27 = arith.select %23, %20, %26 : vector<16x128xi1>, vector<16x128xf32>
    %cst_13 = arith.constant dense<0.000000e+00> : vector<16xf32>
    %28 = vector.multi_reduction <add>, %27, %cst_13 [1] : vector<16x128xf32> to vector<16xf32>
    %29 = vector.shape_cast %28 : vector<16xf32> to vector<16x1xf32>
    %30 = arith.mulf %27, %27 : vector<16x128xf32>
    %cst_14 = arith.constant dense<0.000000e+00> : vector<16xf32>
    %31 = vector.multi_reduction <add>, %30, %cst_14 [1] : vector<16x128xf32> to vector<16xf32>
    %32 = vector.shape_cast %31 : vector<16xf32> to vector<16x1xf32>
    %33 = vector.broadcast %25 : f32 to vector<16x1xf32>
    %34 = arith.divf %29, %33 : vector<16x1xf32>
    %35 = arith.mulf %29, %34 : vector<16x1xf32>
    %36 = arith.subf %32, %35 : vector<16x1xf32>
    %cst_15 = arith.constant 0.000000e+00 : f32
    %37 = vector.broadcast %cst_15 : f32 to vector<16x1xf32>
    %38 = arith.maximumf %36, %37 : vector<16x1xf32>
    %cst_16 = arith.constant 1.000000e+00 : f32
    %39 = arith.subf %25, %cst_16 : f32
    %cst_17 = arith.constant 1.000000e+00 : f32
    %40 = arith.maximumf %39, %cst_17 : f32
    %41 = vector.broadcast %40 : f32 to vector<16x1xf32>
    %42 = arith.divf %38, %41 : vector<16x1xf32>
    %43 = math.sqrt %42 : vector<16x1xf32>
    %cst_18 = arith.constant 9.99999974E-6 : f32
    %44 = vector.broadcast %cst_18 : f32 to vector<16x1xf32>
    %45 = arith.addf %43, %44 : vector<16x1xf32>
    %46 = vector.broadcast %34 : vector<16x1xf32> to vector<16x128xf32>
    %47 = arith.subf %20, %46 : vector<16x128xf32>
    %48 = vector.broadcast %45 : vector<16x1xf32> to vector<16x128xf32>
    %49 = arith.divf %47, %48 : vector<16x128xf32>
    %cst_19 = arith.constant 0.000000e+00 : f32
    %50 = vector.broadcast %cst_19 : f32 to vector<16x128xf32>
    %51 = arith.select %23, %49, %50 : vector<16x128xi1>, vector<16x128xf32>
    %c0_20 = arith.constant 0 : index
    %c0_21 = arith.constant 0 : index
    %c0_22 = arith.constant 0 : index
    %52 = vector.load %arg5[%c0_20, %c0_21, %c0_22] : memref<1x16x128xf32, #tpu.memory_space<vmem>>, vector<1x16x128xf32>
    %53 = vector.shape_cast %52 : vector<1x16x128xf32> to vector<16x128xf32>
    %54 = vector.shape_cast %51 : vector<16x128xf32> to vector<1x16x128xf32>
    tpu.vector_store %arg5[%c0_20, %c0_21, %c0_22], %54 {strides = array<i32>} : memref<1x16x128xf32, #tpu.memory_space<vmem>>, vector<1x16x128xf32>,
    return
  }
  func.func @transform_0(%arg0: i32, %arg1: memref<2xi32, #tpu.memory_space<smem>>) -> (i32, i32, i32) {
    %c0_i32 = arith.constant 0 : i32
    %c0_i32_0 = arith.constant 0 : i32
    %c0_i32_1 = arith.constant 0 : i32
    return %arg0, %c0_i32, %c0_i32_0 : i32, i32, i32
  }
  func.func @transform_1(%arg0: i32, %arg1: memref<2xi32, #tpu.memory_space<smem>>) -> (i32, i32) {
    %c0_i32 = arith.constant 0 : i32
    %c0_i32_0 = arith.constant 0 : i32
    %c0_i32_1 = arith.constant 0 : i32
    return %c0_i32, %c0_i32_0 : i32, i32
  }
  func.func @transform_2(%arg0: i32, %arg1: memref<2xi32, #tpu.memory_space<smem>>) -> (i32, i32) {
    %c0_i32 = arith.constant 0 : i32
    %c0_i32_0 = arith.constant 0 : i32
    %c0_i32_1 = arith.constant 0 : i32
    return %c0_i32, %c0_i32_0 : i32, i32
  }
  func.func @transform_3(%arg0: i32, %arg1: memref<2xi32, #tpu.memory_space<smem>>) -> (i32, i32, i32) {
    %c0_i32 = arith.constant 0 : i32
    %c0_i32_0 = arith.constant 0 : i32
    %c0_i32_1 = arith.constant 0 : i32
    return %arg0, %c0_i32, %c0_i32_0 : i32, i32, i32
  }
}

</mosaic_0001>

<bundles_post_ra>
// kernel: tpu_custom_call.1
= control target key start
LH: loop header
LB: loop body
LE: loop exit
PB: predicated region body
PF: predicated region fallthrough
CT: control target
= control target key end

     0   :  { %s1650_s0 = inlined_call_operand.vmem [shape: s32[2], index: 0, kind: input, shape index: {}]   ;;  %s1651_s1 = inlined_call_operand.vmem [shape: f32[2,129,32], index: 1, kind: input, shape index: {}]   ;;  %s1652_s2 = inlined_call_operand.vmem [shape: f32[64,128], index: 2, kind: input, shape index: {}]   ;;  %s1653_s3 = inlined_call_operand.vmem [shape: f32[16,64], index: 3, kind: input, shape index: {}]   ;;  %s1654_s4 = inlined_call_operand.hbm [shape: f32[2,16,128], index: 4, kind: output, shape index: {}]  }
   0x1   :  { %s9_s17 = sshll.u32 %s1650_s0, 4  ;;  %s10_s17 = int_to_ptr.vmem [resolvable:$true] %s9_s17 }
   0x2   :  { %s1254_s18 = scalar_lea.vmem %s10_s17, 16  ;;  %p1259_p1 = scmp.lt.s32.totalorder %s10_s17, %s10_s17 }
   0x3   :  { %p1255_p0 = scmp.ne.s32.totalorder %s10_s17, %s1254_s18  ;;  %p1260_p2 = scmp.lt.s32.totalorder %s1254_s18, %s1254_s18 }
   0x5   :  { %p1261_p3 = por %p1260_p2, %p1259_p1 }
   0x7   :  { %p1262_p4 = pnand %p1261_p3, %p1255_p0 }
   0x9   :  { %1265 = shalt.err (!%p1262_p4)  }
   0xa   :  { %s1330_s19 = smov [#allocation3]  }
   0xb   :  { %12 = dma.vmem_to_smem %s10_s17, 16, %s1330_s19, [#allocation2] }
   0xc   :  { %1308 = dma.done.wait [#allocation2], 16 }
   0xd   :  { %1309 = vsyncadd [#allocation2], 4294967280 }
   0xe   :  { %14 = sfence }
   0xf   :  { %15 = vsyncpa [#allocation5], 0 }
  0x10   :  { %17 = vsyncpa [#allocation5 + $0x1], 0  ;;  %s1364_s20 = smov 0   ;;  %s1366_s21 = smov 0  }
  0x11   :  { %s1368_s0 = smov 0   ;;  %s1370_s22 = smov 0  }
  0x12 LB: > { %s1385_s23 = sadd.s32 4294967295, %s1328_s22   ;;  %s973_s24 = sadd.s32 4294967294, %s1328_s22   ;;  %s1328_s22 = sphi %s1370_s22, %s1662_s22   ;;  %s1324_s0 = sphi %s1368_s0, %s1661_s0   ;;  %s1320_s21 = sphi %s1366_s21, %s1660_s21   ;;  %s1316_s20 = sphi %s1364_s20, %s1659_s20  }
  0x13   : > { %s1389_s25 = sadd.s32 1, %s1328_s22   ;;  %s98_s26 = sadd.s32 1, %s1324_s0 }
  0x14   : > { %s95_s27 = ssub.s32 %s1328_s22, %s1389_s25  ;;  %p108_p5 = scmp.ne.s32.totalorder %s1324_s0, %s1320_s21 }
  0x15   : > { %p96_p6 = scmp.eq.s32.totalorder %s95_s27, 0  ;;  %p109_p7 = scmp.eq.s32.totalorder %s1385_s23, 1 }
  0x16   : > { %p114_p8 = scmp.ne.s32.totalorder %s1320_s21, %s1316_s20  ;;  %p115_p9 = scmp.eq.s32.totalorder %s973_s24, 1 }
  0x17   : > { %s1400_s28 = scalar_select %p96_p6, %s1324_s0, %s98_s26  }
  0x18   : > { %p1402_p10 = por %p109_p7, %p108_p5  ;;  %p1406_p11 = por %p115_p9, %p114_p8 }
  0x19   : > { %p976_p12 = scmp.ge.s32.totalorder %s1328_s22, 1  ;;  %p147_p13 = scmp.lt.s32.totalorder %s1328_s22, 3 }
  0x1b   : > { %p148_p0 = pnand %p976_p12, %p147_p13 }
  0x1c   : > { %p171_p1 = scmp.lt.s32.totalorder (!%p148_p0), %s1385_s23, 1  ;;  %s1331_s8 = smov (!%p148_p0), 64  }
  0x1d   : > { %151 = sbr.rel (%p148_p0) target bundleno = 898 (0x382), region = 32  ;;  %s176_s13 = sld [smem:[#allocation3 + %s1385_s23]] (!%p148_p0) }
  0x1e   : > { %s1332_s16 = smov (!%p148_p0), 1.0   ;;  %s168_s18 = sand.u32 (!%p148_p0), 1, %s1320_s21  }
  0x1f   : > { %s977_s19 = sshll.u32 (!%p148_p0), %s168_s18, 4  ;;  %s1035_s24 = sshll.u32 (!%p148_p0), %s1385_s23, 8 }
  0x20   : > { %s170_s26 = scalar_lea.vmem (!%p148_p0), [#allocation4], %s977_s19  ;;  %s1604_s7 = scalar_lea.hbm (!%p148_p0), %s1654_s4, %s1035_s24 }
  0x21   : > { %s911_s27 = sshll.u32 (!%p148_p0), %s170_s26, 4  ;;  %s1333_s9 = smov (!%p148_p0), [#allocation4]   ;;  %s1606_s27 = int_to_ptr.vmem [resolvable:$true] %s911_s27 }
  0x22   : > { %v216_v0 = vld [vmem:[%s1652_s2 + $0x38] sm:$0xff]  ;;  %v215_v1 = vld [vmem:[%s1652_s2 + $0x30] sm:$0xff]  ;;  %v214_v2 = vld [vmem:[%s1652_s2 + $0x28] sm:$0xff]  ;;  %s172_s11 = scalar_select %p171_p1, %s1385_s23, 1  ;;  %vm217_vm0 = vcmask 261120   ;;  %vm702_vm1 = vcmask 523264  }
  0x23   : > { %1094 = vmatprep.subr.mxu1 %v216_v0  ;;  %v213_v3 = vld [vmem:[%s1652_s2 + $0x20] sm:$0xff]  ;;  %v196_v4 = vld [vmem:[%s1652_s2 + $0x18] sm:$0xff]  ;;  %v195_v8 = vld [vmem:[%s1652_s2 + $0x10] sm:$0xff]  ;;  %p840_p2 = scmp.gt.s32.totalorder %s176_s13, 1  ;;  %s1610_s23 = scalar_lea.sflag [#allocation5], %s168_s18 }
  0x24   : > { %1095 = vmatpush3.msra.mxu1 %v216_v0  ;;  %s1193_s14 = smul.u32 136, %s172_s11  ;;  %v194_v10 = vld [vmem:[%s1652_s2 + $0x8] sm:$0xff]  ;;  %v193_v12 = vld [vmem:[%s1652_s2] sm:$0xff]  ;;  %s1270_s10 = sshll.u32 %s1333_s9, 4  ;;  %s1271_s10 = int_to_ptr.vmem [resolvable:$false] %s1270_s10 }
  0x25   : > { %1096 = vmatprep.subr.mxu1 %v215_v1  ;;  %s1272_s11 = scalar_lea.vmem %s1271_s10, 512  ;;  %p1273_p6 = scmp.lt.s32.totalorder %s1606_s27, %s1271_s10 }
  0x26   : > { %1097 = vmatpush3.msra.mxu1 %v215_v1  ;;  %s1429_s17 = scalar_lea.vmem %s1651_s1, %s1193_s14 }
  0x27   : > { %1098 = vmatprep.subr.mxu1 %v214_v2  ;;  %v197_v5 = vld [vmem:[%s1429_s17 + $0x1] sm:$0xff]  ;;  %v198_v6 = vld [vmem:[%s1429_s17 + $0x9] sm:$0xff]  ;;  %v199_v7 = vld [vmem:[%s1429_s17 + $0x11] sm:$0xff] }
  0x28   : > { %1099 = vmatpush3.msra.mxu1 %v214_v2  ;;  %1102 = vmatprep.mubr.msk.f32.mxu1 %vm217_vm0, %v197_v5  ;;  %v200_v9 = vld [vmem:[%s1429_s17 + $0x19] sm:$0xff]  ;;  %v201_v11 = vld [vmem:[%s1429_s17 + $0x21] sm:$0xff]  ;;  %v202_v13 = vld [vmem:[%s1429_s17 + $0x29] sm:$0xff] }
  0x29   : > { %1100 = vmatprep.subr.mxu1 %v213_v3  ;;  %v203_v14 = vld [vmem:[%s1429_s17 + $0x31] sm:$0xff]  ;;  %v204_v15 = vld [vmem:[%s1429_s17 + $0x39] sm:$0xff]  ;;  %v205_v16 = vld [vmem:[%s1429_s17 + $0x41] sm:$0xff] }
  0x2a   : > { %1101 = vmatpush3.msra.mxu1 %v213_v3  ;;  %v206_v17 = vld [vmem:[%s1429_s17 + $0x49] sm:$0xff]  ;;  %v207_v18 = vld [vmem:[%s1429_s17 + $0x51] sm:$0xff]  ;;  %v208_v19 = vld [vmem:[%s1429_s17 + $0x59] sm:$0xff] }
  0x2b   : > { %1103 = vmatmul.mubr.msk.f32.vlgmr.msra.gmra.mxu1 %vm217_vm0, %v198_v6  ;;  %1126 = vmatprep.subr.mxu1 %v196_v4  ;;  %v209_v20 = vld [vmem:[%s1429_s17 + $0x61] sm:$0xff]  ;;  %v210_v21 = vld [vmem:[%s1429_s17 + $0x69] sm:$0xff]  ;;  %v211_v22 = vld [vmem:[%s1429_s17 + $0x71] sm:$0xff] }
  0x2c   : > { %1127 = vmatpush3.msra.mxu1 %v196_v4  ;;  %1105 = vmatprep.mubr.msk.f32.mxu1 %vm217_vm0, %v199_v7  ;;  %v212_v23 = vld [vmem:[%s1429_s17 + $0x79] sm:$0xff]  ;;  %v178_v25 = vld [vmem:[%s1429_s17 + $0x8] sm:$0xff]  ;;  %v179_v26 = vld [vmem:[%s1429_s17 + $0x10] sm:$0xff] }
  0x2d   : > { %1128 = vmatprep.subr.mxu1 %v195_v8  ;;  %v177_v24 = vld [vmem:[%s1429_s17] sm:$0xff]  ;;  %v180_v27 = vld [vmem:[%s1429_s17 + $0x18] sm:$0xff]  ;;  %v182_v29 = vld [vmem:[%s1429_s17 + $0x28] sm:$0xff] }
  0x2e   : > { %1129 = vmatpush3.msra.mxu1 %v195_v8  ;;  %v181_v28 = vld [vmem:[%s1429_s17 + $0x20] sm:$0xff]  ;;  %v183_v30 = vld [vmem:[%s1429_s17 + $0x30] sm:$0xff]  ;;  %v184_v31 = vld [vmem:[%s1429_s17 + $0x38] sm:$0xff] }
  0x2f   : > { %1106 = vmatmul.mubr.msk.f32.gmra.mxu1 %vm217_vm0, %v200_v9  ;;  %1130 = vmatprep.subr.mxu1 %v194_v10  ;;  %v185_v32 = vld [vmem:[%s1429_s17 + $0x40] sm:$0xff]  ;;  %v186_v33 = vld [vmem:[%s1429_s17 + $0x48] sm:$0xff]  ;;  %v187_v34 = vld [vmem:[%s1429_s17 + $0x50] sm:$0xff] }
  0x30   : > { %1108 = vmatprep.mubr.msk.f32.mxu1 %vm217_vm0, %v201_v11  ;;  %1131 = vmatpush3.msra.mxu1 %v194_v10  ;;  %v188_v35 = vld [vmem:[%s1429_s17 + $0x58] sm:$0xff]  ;;  %v189_v36 = vld [vmem:[%s1429_s17 + $0x60] sm:$0xff]  ;;  %v190_v37 = vld [vmem:[%s1429_s17 + $0x68] sm:$0xff] }
  0x31   : > { %1132 = vmatprep.subr.mxu1 %v193_v12  ;;  %v191_v38 = vld [vmem:[%s1429_s17 + $0x70] sm:$0xff]  ;;  %v192_v39 = vld [vmem:[%s1429_s17 + $0x78] sm:$0xff] }
  0x32   : > { %1133 = vmatpush3.msra.mxu1 %v193_v12 }
  0x33   : > { %1109 = vmatmul.mubr.msk.f32.gmra.mxu1 %vm217_vm0, %v202_v13 }
  0x34   : > { %1111 = vmatprep.mubr.msk.f32.mxu1 %vm217_vm0, %v203_v14 }
  0x37   : > { %1112 = vmatmul.mubr.msk.f32.gmra.mxu1 %vm217_vm0, %v204_v15 }
  0x38   : > { %1114 = vmatprep.mubr.msk.f32.mxu1 %vm217_vm0, %v205_v16 }
  0x3b   : > { %1115 = vmatmul.mubr.msk.f32.gmra.mxu1 %vm217_vm0, %v206_v17 }
  0x3c   : > { %1117 = vmatprep.mubr.msk.f32.mxu1 %vm217_vm0, %v207_v18 }
  0x3f   : > { %1118 = vmatmul.mubr.msk.f32.gmra.mxu1 %vm217_vm0, %v208_v19 }
  0x40   : > { %1120 = vmatprep.mubr.msk.f32.mxu1 %vm217_vm0, %v209_v20 }
  0x43   : > { %1121 = vmatmul.mubr.msk.f32.gmra.mxu1 %vm217_vm0, %v210_v21 }
  0x44   : > { %1123 = vmatprep.mubr.msk.f32.mxu1 %vm217_vm0, %v211_v22 }
  0x47   : > { %1124 = vmatmul.mubr.msk.f32.gmra.mxu1 %vm217_vm0, %v212_v23 }
  0x48   : > { %1134 = vmatprep.mubr.msk.f32.mxu1 %vm217_vm0, %v177_v24 }
  0x4b   : > { %1135 = vmatmul.mubr.msk.f32.vlgmr.msra.gmra.mxu1 %vm217_vm0, %v178_v25 }
  0x4c   : > { %1137 = vmatprep.mubr.msk.f32.mxu1 %vm217_vm0, %v179_v26 }
  0x4f   : > { %1138 = vmatmul.mubr.msk.f32.gmra.mxu1 %vm217_vm0, %v180_v27 }
  0x50   : > { %1140 = vmatprep.mubr.msk.f32.mxu1 %vm217_vm0, %v181_v28 }
  0x53   : > { %1141 = vmatmul.mubr.msk.f32.gmra.mxu1 %vm217_vm0, %v182_v29 }
  0x54   : > { %1143 = vmatprep.mubr.msk.f32.mxu1 %vm217_vm0, %v183_v30 }
  0x57   : > { %1144 = vmatmul.mubr.msk.f32.gmra.mxu1 %vm217_vm0, %v184_v31 }
  0x58   : > { %1146 = vmatprep.mubr.msk.f32.mxu1 %vm217_vm0, %v185_v32 }
  0x5b   : > { %1147 = vmatmul.mubr.msk.f32.gmra.mxu1 %vm217_vm0, %v186_v33 }
  0x5c   : > { %1149 = vmatprep.mubr.msk.f32.mxu1 %vm217_vm0, %v187_v34 }
  0x5f   : > { %1150 = vmatmul.mubr.msk.f32.gmra.mxu1 %vm217_vm0, %v188_v35 }
  0x60   : > { %1152 = vmatprep.mubr.msk.f32.mxu1 %vm217_vm0, %v189_v36 }
  0x63   : > { %1153 = vmatmul.mubr.msk.f32.gmra.mxu1 %vm217_vm0, %v190_v37 }
  0x64   : > { %1155 = vmatprep.mubr.msk.f32.mxu1 %vm217_vm0, %v191_v38 }
  0x67   : > { %1156 = vmatmul.mubr.msk.f32.gmra.mxu1 %vm217_vm0, %v192_v39 }
  0xeb   : > { %v1507_v40 = vpop.f32.mrf.mxu1 }
  0xed   : > { %v1509_v41 = vpop.f32.mrf.mxu1 }
  0xef   : > { %v1511_v42 = vpop.f32.mrf.mxu1 }
  0xf1   : > { %v342_v43 = vpop.f32.mrf.mxu1 }
  0xf3   : > { %v1110_v44 = vpop.f32.mrf.mxu1 }
  0xf5   : > { %v352_v45 = vpop.f32.mrf.mxu1 }
  0xf7   : > { %v1113_v46 = vpop.f32.mrf.mxu1 }
  0xf9   : > { %v362_v47 = vpop.f32.mrf.mxu1 }
  0xfb   : > { %v1116_v48 = vpop.f32.mrf.mxu1 }
  0xfd   : > { %v372_v49 = vpop.f32.mrf.mxu1 }
  0xff   : > { %v1119_v50 = vpop.f32.mrf.mxu1 }
 0x101   : > { %v382_v51 = vpop.f32.mrf.mxu1 }
 0x103   : > { %v1122_v52 = vpop.f32.mrf.mxu1 }
 0x105   : > { %v392_v53 = vpop.f32.mrf.mxu1 }
 0x107   : > { %v1125_v54 = vpop.f32.mrf.mxu1 }
 0x109   : > { %v402_v55 = vpop.f32.mrf.mxu1 }
 0x10b   : > { %v1136_v56 = vpop.f32.mrf.mxu1 }
 0x10c   : > { %v531_v36 = vadd.f32 %v1136_v56, %v1507_v40 }
 0x10d   : > { %v525_v57 = vpop.f32.mrf.mxu1 }
 0x10e   : > { %v526_v32 = vadd.f32 %v525_v57, %v1509_v41  ;;  %v605_v39 = vmul.f32 %v531_v36, %v531_v36  ;;  %v700_v41 = vld [vmem:[%s1653_s3] sm:$0xff] }
 0x10f   : > { %v1139_v58 = vpop.f32.mrf.mxu1  ;;  %1190 = vmatprep.mubr.msk.f32.mxu0 %vm702_vm1, %v700_v41 }
 0x110   : > { %v541_v33 = vadd.f32 %v1139_v58, %v1511_v42  ;;  %v1535_v37 = vmul.f32 %v526_v32, %v526_v32 }
 0x111   : > { %v535_v59 = vpop.f32.mrf.mxu1 }
 0x112   : > { %v536_v28 = vadd.f32 %v535_v59, %v342_v43  ;;  %v607_v38 = vmul.f32 %v541_v33, %v541_v33 }
 0x113   : > { %v1142_v60 = vpop.f32.mrf.mxu1 }
 0x114   : > { %v551_v29 = vadd.f32 %v1142_v60, %v1110_v44  ;;  %v1529_v34 = vmul.f32 %v536_v28, %v536_v28 }
 0x115   : > { %v545_v61 = vpop.f32.mrf.mxu1 }
 0x116   : > { %v546_v24 = vadd.f32 %v545_v61, %v352_v45  ;;  %v609_v35 = vmul.f32 %v551_v29, %v551_v29 }
 0x117   : > { %v1145_v62 = vpop.f32.mrf.mxu1 }
 0x118   : > { %v561_v25 = vadd.f32 %v1145_v62, %v1113_v46  ;;  %v1522_v30 = vmul.f32 %v546_v24, %v546_v24 }
 0x119   : > { %v555_v63 = vpop.f32.mrf.mxu1 }
 0x11a   : > { %v556_v20 = vadd.f32 %v555_v63, %v362_v47  ;;  %v611_v31 = vmul.f32 %v561_v25, %v561_v25 }
 0x11b   : > { %v1148_v0 = vpop.f32.mrf.mxu1 }
 0x11c   : > { %v571_v21 = vadd.f32 %v1148_v0, %v1116_v48  ;;  %v610_v26 = vmul.f32 %v556_v20, %v556_v20 }
 0x11d   : > { %v565_v1 = vpop.f32.mrf.mxu1 }
 0x11e   : > { %v566_v16 = vadd.f32 %v565_v1, %v372_v49  ;;  %v613_v27 = vmul.f32 %v571_v21, %v571_v21 }
 0x11f   : > { %v1151_v2 = vpop.f32.mrf.mxu1 }
 0x120   : > { %v581_v17 = vadd.f32 %v1151_v2, %v1119_v50  ;;  %v612_v22 = vmul.f32 %v566_v16, %v566_v16  ;;  %v838_v16 = vstv %s176_s13  ;;  %s1664_s13 = smov (!%p840_p2, %s176_s13), 1 }
 0x121   : > { %v575_v3 = vpop.f32.mrf.mxu1  ;;  %s842_s14 = scvt.s32.f32 %s1664_s13 }
 0x122   : > { %v576_v12 = vadd.f32 %v575_v3, %v382_v51  ;;  %v615_v23 = vmul.f32 %v581_v17, %v581_v17 }
 0x123   : > { %v1154_v4 = vpop.f32.mrf.mxu1  ;;  %s1029_s15 = sadd.f32 -1.0, %s842_s14 }
 0x124   : > { %v591_v5 = vadd.f32 %v1154_v4, %v1122_v52  ;;  %v614_v18 = vmul.f32 %v576_v12, %v576_v12 }
 0x125   : > { %v585_v6 = vpop.f32.mrf.mxu1  ;;  %s866_s17 = smax.f32 %s1332_s16, %s1029_s15 }
 0x126   : > { %v617_v7 = vmul.f32 %v591_v5, %v591_v5  ;;  %v586_v8 = vadd.f32 %v585_v6, %v392_v53 }
 0x127   : > { %v1157_v9 = vpop.f32.mrf.mxu1 }
 0x128   : > { %v601_v10 = vadd.f32 %v1157_v9, %v1125_v54  ;;  %662 = vrot.lane.b32.xlu1 %v617_v7, %s1331_s8  ;;  %v616_v13 = vmul.f32 %v586_v8, %v586_v8  ;;  %v701_v9 = vld [vmem:[%s1653_s3 + $0x8] sm:$0xff] }
 0x129   : > { %v595_v11 = vpop.f32.mrf.mxu1 }
 0x12a   : > { %v619_v14 = vmul.f32 %v601_v10, %v601_v10  ;;  %v596_v15 = vadd.f32 %v595_v11, %v402_v55 }
 0x12c   : > { %666 = vrot.lane.b32.xlu0 %v619_v14, %s1331_s8  ;;  %660 = vrot.lane.b32.xlu1 %v616_v13, %s1331_s8  ;;  %v618_v19 = vmul.f32 %v596_v15, %v596_v15 }
 0x130   : > { %664 = vrot.lane.b32.xlu0 %v618_v19, %s1331_s8  ;;  %656 = vrot.lane.b32.xlu1 %v614_v18, %s1331_s8 }
 0x134   : > { %658 = vrot.lane.b32.xlu0 %v615_v23, %s1331_s8  ;;  %652 = vrot.lane.b32.xlu1 %v612_v22, %s1331_s8 }
 0x138   : > { %654 = vrot.lane.b32.xlu0 %v613_v27, %s1331_s8  ;;  %648 = vrot.lane.b32.xlu1 %v610_v26, %s1331_s8 }
 0x13c   : > { %650 = vrot.lane.b32.xlu0 %v611_v31, %s1331_s8  ;;  %644 = vrot.lane.b32.xlu1 %v1522_v30, %s1331_s8 }
 0x140   : > { %646 = vrot.lane.b32.xlu0 %v609_v35, %s1331_s8  ;;  %640 = vrot.lane.b32.xlu1 %v1529_v34, %s1331_s8 }
 0x144   : > { %642 = vrot.lane.b32.xlu0 %v607_v38, %s1331_s8  ;;  %636 = vrot.lane.b32.xlu1 %v1535_v37, %s1331_s8 }
 0x148   : > { %638 = vrot.lane.b32.xlu0 %v605_v39, %s1331_s8  ;;  %s1266_s8 = scalar_lea.vmem %s1606_s27, 256 }
 0x149   : > { %p1267_p3 = scmp.ne.s32.totalorder %s1606_s27, %s1266_s8  ;;  %p1274_p7 = scmp.lt.s32.totalorder %s1272_s11, %s1266_s8 }
 0x14b   : > { %p1268_p4 = pnand %p1267_p3, %p1402_p10  ;;  %p1275_p8 = por %p1274_p7, %p1273_p6 }
 0x14d   : > { %p1269_p5 = pneg %p1268_p4 }
 0x14f   : > { %p1276_p9 = pnand %p1275_p8, %p1269_p5 }
 0x19a   : > { %v663_v43 = vpop.permute.xlu1 %662 }
 0x19b   : > { %v697_v46 = vadd.f32 %v663_v43, %v617_v7 }
 0x19e   : > { %v667_v42 = vpop.permute.xlu0 %666  ;;  %v661_v47 = vpop.permute.xlu1 %660 }
 0x19f   : > { %v699_v40 = vadd.f32 %v667_v42, %v619_v14  ;;  %v696_v48 = vadd.f32 %v661_v47, %v616_v13  ;;  %v836_v14 = vlaneseq }
 0x1a1   : > { %1158 = vmatprep.subr.msk.mxu0 %vm702_vm1, %v699_v40  ;;  %v837_v15 = vand.u32 127, %v836_v14 }
 0x1a2   : > { %1159 = vmatpush3.xpose.msk.msra.mxu0 %vm702_vm1, %v699_v40  ;;  %v665_v44 = vpop.permute.xlu0 %664  ;;  %v657_v51 = vpop.permute.xlu1 %656 }
 0x1a3   : > { %v698_v45 = vadd.f32 %v665_v44, %v618_v19  ;;  %v694_v52 = vadd.f32 %v657_v51, %v614_v18  ;;  %vm1585_vm2 = vcmp.lt.s32.totalorder %v837_v15, %v838_v16 }
 0x1a5   : > { %1160 = vmatprep.subr.msk.mxu0 %vm702_vm1, %v698_v45 }
 0x1a6   : > { %1161 = vmatpush3.xpose.msk.msra.mxu0 %vm702_vm1, %v698_v45  ;;  %v659_v49 = vpop.permute.xlu0 %658  ;;  %v653_v55 = vpop.permute.xlu1 %652 }
 0x1a7   : > { %1162 = vmatprep.subr.msk.mxu0 %vm702_vm1, %v697_v46  ;;  %v695_v50 = vadd.f32 %v659_v49, %v615_v23  ;;  %v692_v56 = vadd.f32 %v653_v55, %v612_v22 }
 0x1aa   : > { %1163 = vmatpush3.xpose.msk.msra.mxu0 %vm702_vm1, %v697_v46  ;;  %v655_v53 = vpop.permute.xlu0 %654  ;;  %v649_v59 = vpop.permute.xlu1 %648 }
 0x1ab   : > { %1164 = vmatprep.subr.msk.mxu0 %vm702_vm1, %v696_v48  ;;  %v693_v54 = vadd.f32 %v655_v53, %v613_v27  ;;  %v690_v60 = vadd.f32 %v649_v59, %v610_v26  ;;  %v855_v26 = vstv %s842_s14  ;;  %v867_v27 = vstv %s866_s17 }
 0x1ae   : > { %1165 = vmatpush3.xpose.msk.msra.mxu0 %vm702_vm1, %v696_v48  ;;  %v651_v57 = vpop.permute.xlu0 %650  ;;  %v645_v63 = vpop.permute.xlu1 %644 }
 0x1af   : > { %1166 = vmatprep.subr.msk.mxu0 %vm702_vm1, %v695_v50  ;;  %v691_v58 = vadd.f32 %v651_v57, %v611_v31  ;;  %v688_v0 = vadd.f32 %v645_v63, %v1522_v30 }
 0x1b2   : > { %1167 = vmatpush3.xpose.msk.msra.mxu0 %vm702_vm1, %v695_v50  ;;  %v647_v61 = vpop.permute.xlu0 %646  ;;  %v641_v3 = vpop.permute.xlu1 %640 }
 0x1b3   : > { %1168 = vmatprep.subr.msk.mxu0 %vm702_vm1, %v694_v52  ;;  %v689_v62 = vadd.f32 %v647_v61, %v609_v35  ;;  %v686_v4 = vadd.f32 %v641_v3, %v1529_v34 }
 0x1b6   : > { %1169 = vmatpush3.xpose.msk.msra.mxu0 %vm702_vm1, %v694_v52  ;;  %v643_v1 = vpop.permute.xlu0 %642  ;;  %v637_v7 = vpop.permute.xlu1 %636 }
 0x1b7   : > { %1170 = vmatprep.subr.msk.mxu0 %vm702_vm1, %v693_v54  ;;  %v687_v2 = vadd.f32 %v643_v1, %v607_v38  ;;  %v684_v8 = vadd.f32 %v637_v7, %v1535_v37 }
 0x1ba   : > { %1171 = vmatpush3.xpose.msk.msra.mxu0 %vm702_vm1, %v693_v54  ;;  %v639_v5 = vpop.permute.xlu0 %638 }
 0x1bb   : > { %1172 = vmatprep.subr.msk.mxu0 %vm702_vm1, %v692_v56  ;;  %v685_v6 = vadd.f32 %v639_v5, %v605_v39 }
 0x1be   : > { %1173 = vmatpush3.xpose.msk.msra.mxu0 %vm702_vm1, %v692_v56 }
 0x1bf   : > { %1174 = vmatprep.subr.msk.mxu0 %vm702_vm1, %v691_v58 }
 0x1c2   : > { %1175 = vmatpush3.xpose.msk.msra.mxu0 %vm702_vm1, %v691_v58 }
 0x1c3   : > { %1176 = vmatprep.subr.msk.mxu0 %vm702_vm1, %v690_v60 }
 0x1c6   : > { %1177 = vmatpush3.xpose.msk.msra.mxu0 %vm702_vm1, %v690_v60 }
 0x1c7   : > { %1178 = vmatprep.subr.msk.mxu0 %vm702_vm1, %v689_v62 }
 0x1ca   : > { %1179 = vmatpush3.xpose.msk.msra.mxu0 %vm702_vm1, %v689_v62 }
 0x1cb   : > { %1180 = vmatprep.subr.msk.mxu0 %vm702_vm1, %v688_v0 }
 0x1ce   : > { %1181 = vmatpush3.xpose.msk.msra.mxu0 %vm702_vm1, %v688_v0 }
 0x1cf   : > { %1182 = vmatprep.subr.msk.mxu0 %vm702_vm1, %v687_v2 }
 0x1d2   : > { %1183 = vmatpush3.xpose.msk.msra.mxu0 %vm702_vm1, %v687_v2 }
 0x1d3   : > { %1184 = vmatprep.subr.msk.mxu0 %vm702_vm1, %v686_v4 }
 0x1d6   : > { %1185 = vmatpush3.xpose.msk.msra.mxu0 %vm702_vm1, %v686_v4 }
 0x1d7   : > { %1186 = vmatprep.subr.msk.mxu0 %vm702_vm1, %v685_v6 }
 0x1da   : > { %1187 = vmatpush3.xpose.msk.msra.mxu0 %vm702_vm1, %v685_v6 }
 0x1db   : > { %1188 = vmatprep.subr.msk.mxu0 %vm702_vm1, %v684_v8 }
 0x1de   : > { %1189 = vmatpush3.xpose.msk.msra.mxu0 %vm702_vm1, %v684_v8 }
 0x1e1   : > { %1191 = vmatmul.mubr.msk.f32.vlgmr.msra.gmra.mxu0 %vm702_vm1, %v701_v9 }
 0x2a1   : > { %v1192_v10 = vpop.f32.mrf.mxu0 }
 0x2a2   : > { %v829_v11 = vadd.f32 5.9604645e-08, %v1192_v10 }
 0x2a3   : > { %v823_v12 = vpop.f32.mrf.mxu0 }
 0x2a4   : > { %1238 = vlog2.f32 %v829_v11  ;;  %v824_v13 = vadd.f32 5.9604645e-08, %v823_v12 }
 0x2a6   : > { %1240 = vlog2.f32 %v824_v13 }
 0x2a7   : > { %1242 = vrcp.f32 %v855_v26 }
 0x2a8   : > { %1244 = vrcp.f32 %v867_v27 }
 0x2b1   : > { %v1239_v17 = vpop.eup %1238 }
 0x2b2   : > { %v1589_v19 = vmul.f32 0.6931472, %v1239_v17 }
 0x2b3   : > { %v1241_v20 = vpop.eup %1240 }
 0x2b4   : > { %v844_v21 = vsel %vm1585_vm2, %v1589_v19, 0.0  ;;  %v833_v22 = vmul.f32 0.6931472, %v1241_v20  ;;  %v1243_v28 = vpop.eup %1242 }
 0x2b5   : > { %847 = vadd.xlane.f32.xlu1 %v844_v21  ;;  %v850_v25 = vmul.f32 %v844_v21, %v844_v21  ;;  %v1245_v36 = vpop.eup %1244 }
 0x2b6   : > { %v843_v23 = vsel %vm1585_vm2, %v833_v22, 0.0 }
 0x2b7   : > { %845 = vadd.xlane.f32.xlu0 %v843_v23  ;;  %v849_v24 = vmul.f32 %v843_v23, %v843_v23 }
 0x2bb   : > { %851 = vadd.xlane.f32.xlu0 %v849_v24 }
 0x2bf   : > { %853 = vadd.xlane.f32.xlu0 %v850_v25 }
 0x33e   : > { %v848_v29 = vpop.xlane.xlu1 %847 }
 0x33f   : > { %v858_v32 = vmul.f32 %v1243_v28, %v848_v29 }
 0x340   : > { %v846_v30 = vpop.xlane.xlu0 %845 }
 0x341   : > { %v857_v31 = vmul.f32 %v1243_v28, %v846_v30  ;;  %v860_v37 = vmul.f32 %v858_v32, %v848_v29  ;;  %v888_v60 = vsub.f32 %v1589_v19, %v858_v32 }
 0x343   : > { %v859_v33 = vmul.f32 %v857_v31, %v846_v30  ;;  %v887_v56 = vsub.f32 %v833_v22, %v857_v31 }
 0x344   : > { %v852_v34 = vpop.xlane.xlu0 %851 }
 0x345   : > { %v861_v35 = vsub.f32 %v852_v34, %v859_v33 }
 0x347   : > { %v863_v38 = vmax.f32 %v861_v35, 0.0 }
 0x348   : > { %v854_v39 = vpop.xlane.xlu0 %853 }
 0x349   : > { %v869_v41 = vmul.f32 %v1245_v36, %v863_v38  ;;  %v862_v42 = vsub.f32 %v854_v39, %v860_v37 }
 0x34b   : > { %1246 = vrsqrt.f32 %v869_v41  ;;  %v864_v40 = vmax.f32 %v862_v42, 0.0  ;;  %vm873_vm3 = vcmp.eq.f32.partialorder %v869_v41, inf  ;;  %v876_v46 = vand.u32 2147483648, %v869_v41 }
 0x34c   : > { %vm875_vm4 = vcmp.eq.f32.partialorder %v869_v41, 0.0 }
 0x34d   : > { %v870_v43 = vmul.f32 %v1245_v36, %v864_v40 }
 0x34f   : > { %1248 = vrsqrt.f32 %v870_v43  ;;  %vm880_vm5 = vcmp.eq.f32.partialorder %v870_v43, inf  ;;  %v883_v52 = vand.u32 2147483648, %v870_v43  ;;  %vm882_vm6 = vcmp.eq.f32.partialorder %v870_v43, 0.0 }
 0x358   : > { %v1247_v44 = vpop.eup %1246 }
 0x359   : > { %v872_v45 = vmul.f32 %v1247_v44, %v869_v41 }
 0x35b   : > { %v874_v47 = vsel %vm873_vm3, %v869_v41, %v872_v45 }
 0x35c   : > { %v877_v48 = vsel %vm875_vm4, %v876_v46, %v874_v47  ;;  %v1249_v49 = vpop.eup %1248 }
 0x35d   : > { %v885_v50 = vadd.f32 1e-05, %v877_v48  ;;  %v879_v51 = vmul.f32 %v1249_v49, %v870_v43 }
 0x35f   : > { %1250 = vrcp.f32 %v885_v50  ;;  %v881_v53 = vsel %vm880_vm5, %v870_v43, %v879_v51 }
 0x360   : > { %v884_v54 = vsel %vm882_vm6, %v883_v52, %v881_v53 }
 0x361   : > { %v886_v55 = vadd.f32 1e-05, %v884_v54 }
 0x363   : > { %1252 = vrcp.f32 %v886_v55 }
 0x36c   : > { %v1251_v57 = vpop.eup %1250 }
 0x36d   : > { %v890_v58 = vmul.f32 %v1251_v57, %v887_v56 }
 0x36f   : > { %v893_v59 = vsel %vm1585_vm2, %v890_v58, 0.0 }
 0x370   : > { %895 = vst [vmem:[%s170_s26] sm:$0xff] %v893_v59  ;;  %v1253_v61 = vpop.eup %1252 }
 0x371   : > { %v892_v62 = vmul.f32 %v1253_v61, %v888_v60 }
 0x373   : > { %v894_v63 = vsel %vm1585_vm2, %v892_v62, 0.0 }
 0x374   : > { %896 = vst [vmem:[%s170_s26 + $0x8] sm:$0xff] %v894_v63 }
 0x375   : > { %1279 = shalt.err (!%p1276_p9)
}
 0x376   : > { %s1280_s12 = scalar_lea.hbm %s1604_s7, 256  ;;  %s1284_s15 = scalar_lea.hbm %s1654_s4, 512 }
 0x377   : > { %p1281_p12 = scmp.ne.s32.totalorder %s1604_s7, %s1280_s12  ;;  %p1285_p1 = scmp.lt.s32.totalorder %s1604_s7, %s1654_s4 }
 0x378   : > { %p1286_p2 = scmp.lt.s32.totalorder %s1284_s15, %s1280_s12 }
 0x379   : > { %p1282_p13 = pnand %p1281_p12, %p1402_p10 }
 0x37a   : > { %p1287_p3 = por %p1286_p2, %p1285_p1 }
 0x37b   : > { %p1283_p0 = pneg %p1282_p13 }
 0x37d   : > { %p1288_p4 = pnand %p1287_p3, %p1283_p0 }
 0x37f   : > { %1291 = shalt.err (!%p1288_p4)
}
 0x380   : > { %s1334_s18 = smov 128   ;;  %s1335_s19 = smov 8  }
 0x381   : > { %1194 = dma.vmem_to_hbm [thread:$0]  (%p1402_p10), %s1606_s27, 256, %s1604_s7, %s1610_s23, %s1334_s18, %s1334_s18, %s1335_s19  }
 0x382 PF: > { %p1200_p5 = scmp.ge.s32.totalorder %s1328_s22, 2  ;;  %s926_s24 = sand.u32 1, %s1316_s20  }
 0x383   : > { %s927_s26 = scalar_lea.sflag [#allocation5], %s926_s24 }
 0x384   : > { %p1197_p6 = pnand %p1200_p5, %p1406_p11 }
 0x386   : > { %p1198_p7 = pneg %p1197_p6 }
 0x388   : > { %1311 = dma.done.wait (%p1198_p7), %s927_s26, 256  }
 0x389   : > { %1313 = vsyncadd (%p1198_p7), %s927_s26, 4294967040  ;;  %p20_p8 = scmp.ge.s32.totalorder %s1389_s25, 4   ;;  %s1659_s20 = smov %s1320_s21 }
 0x38a   : > { %s1660_s21 = smov %s1324_s0  ;;  %s1661_s0 = smov %s1400_s28 }
 0x38b   : > { %s1662_s22 = smov %s1389_s25  ;;  %22 = sbr.rel (!%p20_p8) target bundleno = 18 (0x12), region = 67 }
 0x390   :  { %932 = vsyncpa [#allocation5], 1 }
 0x391   :  { %934 = vsyncpa [#allocation5 + $0x1], 1 }

</bundles_post_ra>
